<compile_context>
chip_gen: v7x
topology: tpu7x:2x2x1
jax: 0.10.0
libtpu: 0.0.40
codegen_flags: <defaults>
</compile_context>

<pallas_src>
import jax
import jax.numpy as jnp
from jax.experimental import pallas as pl
from jax.experimental.pallas import tpu as pltpu


def _round_up(x, m):
    return ((x + m - 1) // m) * m


def _linear_kernel(x_ref, w_ref, b_ref, o_ref):
    # x_ref: [TILE_M, H] f32   w_ref: [H, E] bf16 (resident)
    # b_ref: [1, E]      f32   o_ref: [TILE_M, E] out_dtype
    x_bf = x_ref[...].astype(jnp.bfloat16)          # VPU cast, fused in-kernel
    acc = jnp.dot(x_bf, w_ref[...], preferred_element_type=jnp.float32)  # MXU
    o_ref[...] = (acc + b_ref[...]).astype(o_ref.dtype)


def wrapped_model_forward(x, w, b, label=None, tile_m=1024, out_dtype=None):
    """Equivalent of WrappedModel(inner_linear).forward(x, label).

    x : [B, S, H] float32   (batch, frames, hidden)
    w : [E, H]    float32   (PyTorch nn.Linear weight layout)
    b : [E]       float32
    `label` is accepted and ignored (delegation semantics of WrappedModel).
    Returns [B, S, E] in `out_dtype` (default: x.dtype).
    """
    del label  # ignored by the inner module, matching the PyTorch wrapper

    B, S, H = x.shape
    E = w.shape[0]
    M = B * S
    out_dtype = x.dtype if out_dtype is None else jnp.dtype(out_dtype)
    out_itemsize = jnp.dtype(out_dtype).itemsize

    # Row tile: multiple of 16 (one bf16 vreg = 16x128 rows x lanes), clamped
    # to the problem size; guarantee >= 2 tiles when splittable so both v7x
    # TensorCores stream independently.
    tile_m = min(tile_m, _round_up(M, 16))
    if pl.cdiv(M, tile_m) == 1 and M >= 32:
        tile_m = _round_up(pl.cdiv(M, 2), 16)
    grid = (pl.cdiv(M, tile_m),)

    # Free reshape (contiguous), no cast, no pad: the kernel reads f32 directly.
    x2d = x.reshape(M, H)
    # Weight/bias are tiny and stay VMEM-resident; one-time bf16 cast + transpose.
    w_t = w.T.astype(jnp.bfloat16)                  # [H, E]
    b2d = b.astype(jnp.float32).reshape(1, E)

    # VMEM budget derived from the actual footprint (everything is
    # double-buffered by default), with 2x headroom; v7x-safe (64 MiB VMEM).
    x_blk = tile_m * H * x.dtype.itemsize
    o_blk = tile_m * E * out_itemsize
    resident = H * E * 2 + E * 4
    vmem_limit = int(min(max(2 * 2 * (x_blk + o_blk + resident),
                             4 * 1024 * 1024),
                         32 * 1024 * 1024))

    cost = pl.CostEstimate(
        flops=2 * M * H * E,
        transcendentals=0,
        bytes_accessed=M * H * x.dtype.itemsize + H * E * 2 + E * 4
        + M * E * out_itemsize,
    )

    y2d = pl.pallas_call(
        _linear_kernel,
        out_shape=jax.ShapeDtypeStruct((M, E), out_dtype),
        grid_spec=pl.GridSpec(
            grid=grid,
            in_specs=[
                pl.BlockSpec((tile_m, H), lambda i: (i, 0)),  # row tile of x (f32)
                pl.BlockSpec((H, E), lambda i: (0, 0)),       # resident bf16 weight
                pl.BlockSpec((1, E), lambda i: (0, 0)),       # resident f32 bias
            ],
            out_specs=pl.BlockSpec((tile_m, E), lambda i: (i, 0)),
        ),
        compiler_params=pltpu.CompilerParams(
            dimension_semantics=("parallel",),   # independent row tiles (megacore)
            vmem_limit_bytes=vmem_limit,
        ),
        cost_estimate=cost,
    )(x2d, w_t, b2d)

    return y2d.reshape(B, S, E)


if __name__ == "__main__":
    key = jax.random.PRNGKey(0)
    k_x, k_w, k_b = jax.random.split(key, 3)

    B, S, H, E = 2, 8, 32, 16  # batch, frames, hidden, embedding dim

    x = jax.random.normal(k_x, (B, S, H), dtype=jnp.float32)
    # Deterministic parameter init (PyTorch Linear stores W as [E, H]).
    w = jax.random.normal(k_w, (E, H), dtype=jnp.float32) * (1.0 / jnp.sqrt(H))
    b = jax.random.normal(k_b, (E,), dtype=jnp.float32) * 0.01

    out = wrapped_model_forward(x, w, b, label=None)
    out = jax.block_until_ready(out)

    # Reference 1: identical numerics (bf16 operands, f32 accumulation + bias).
    x_bf = x.reshape(B * S, H).astype(jnp.bfloat16)
    w_bf = w.astype(jnp.bfloat16)
    ref_bf = (jnp.dot(x_bf, w_bf.T, preferred_element_type=jnp.float32) + b)
    ref_bf = ref_bf.reshape(B, S, E)

    # Reference 2: true fp32 nn.Linear numerics (loose tolerance — the kernel
    # deliberately uses bf16 MXU inputs).
    ref_f32 = jnp.einsum("bsh,eh->bse", x, w) + b

    assert out.shape == (B, S, E), "bad output shape"
    assert out.dtype == x.dtype, "bad output dtype"
    assert jnp.allclose(out, ref_bf, atol=1e-3, rtol=1e-3), "mismatch vs bf16 ref"
    assert jnp.allclose(out, ref_f32, atol=5e-2, rtol=5e-2), "mismatch vs fp32 ref"

    print("KERNEL_OK")
</pallas_src>

<mosaic_0001>
module attributes {stable_mosaic.version = 11 : i64} {
  func.func @_linear_kernel(%arg0: i32, %arg1: memref<16x32xf32, #tpu.memory_space<vmem>>, %arg2: memref<32x16xbf16, #tpu.memory_space<vmem>>, %arg3: memref<1x16xf32, #tpu.memory_space<vmem>>, %arg4: memref<16x16xf32, #tpu.memory_space<vmem>>) attributes {dimension_semantics = [#tpu.dimension_semantics<parallel>], iteration_bounds = array<i64: 1>, scalar_prefetch = 0 : i64, scratch_operands = 0 : i64, tpu.core_type = #tpu.core_type<tc>, window_params = [{transform_indices = @transform_0, window_bounds = array<i64: 16, 32>}, {pipeline_mode = #tpu.pipeline_mode<synchronous>, transform_indices = @transform_1, window_bounds = array<i64: 32, 16>}, {pipeline_mode = #tpu.pipeline_mode<synchronous>, transform_indices = @transform_2, window_bounds = array<i64: 1, 16>}, {transform_indices = @transform_3, window_bounds = array<i64: 16, 16>}]} {
    %c0 = arith.constant 0 : index
    %c0_0 = arith.constant 0 : index
    %0 = vector.load %arg1[%c0, %c0_0] : memref<16x32xf32, #tpu.memory_space<vmem>>, vector<16x32xf32>
    %1 = arith.truncf %0 : vector<16x32xf32> to vector<16x32xbf16>
    %c0_1 = arith.constant 0 : index
    %c0_2 = arith.constant 0 : index
    %2 = vector.load %arg2[%c0_1, %c0_2] : memref<32x16xbf16, #tpu.memory_space<vmem>>, vector<32x16xbf16>
    %cst = arith.constant dense<0.000000e+00> : vector<16x16xf32>
    %3 = tpu.matmul %1, %2, %cst {dimension_numbers = #tpu.dot_dimension_numbers<[1], [0], [0], [1], [0, 0, 1, 1], [], []>} : vector<16x32xbf16>, vector<32x16xbf16>, vector<16x16xf32> -> vector<16x16xf32>
    %c0_3 = arith.constant 0 : index
    %c0_4 = arith.constant 0 : index
    %4 = vector.load %arg3[%c0_3, %c0_4] : memref<1x16xf32, #tpu.memory_space<vmem>>, vector<1x16xf32>
    %5 = vector.broadcast %4 : vector<1x16xf32> to vector<16x16xf32>
    %6 = arith.addf %3, %5 : vector<16x16xf32>
    %c0_5 = arith.constant 0 : index
    %c0_6 = arith.constant 0 : index
    %7 = vector.load %arg4[%c0_5, %c0_6] : memref<16x16xf32, #tpu.memory_space<vmem>>, vector<16x16xf32>
    tpu.vector_store %arg4[%c0_5, %c0_6], %6 {strides = array<i32>} : memref<16x16xf32, #tpu.memory_space<vmem>>, vector<16x16xf32>,
    return
  }
  func.func @transform_0(%arg0: i32) -> (i32, i32) {
    %c0_i32 = arith.constant 0 : i32
    %c0_i32_0 = arith.constant 0 : i32
    return %arg0, %c0_i32 : i32, i32
  }
  func.func @transform_1(%arg0: i32) -> (i32, i32) {
    %c0_i32 = arith.constant 0 : i32
    %c0_i32_0 = arith.constant 0 : i32
    %c0_i32_1 = arith.constant 0 : i32
    return %c0_i32, %c0_i32_0 : i32, i32
  }
  func.func @transform_2(%arg0: i32) -> (i32, i32) {
    %c0_i32 = arith.constant 0 : i32
    %c0_i32_0 = arith.constant 0 : i32
    %c0_i32_1 = arith.constant 0 : i32
    return %c0_i32, %c0_i32_0 : i32, i32
  }
  func.func @transform_3(%arg0: i32) -> (i32, i32) {
    %c0_i32 = arith.constant 0 : i32
    %c0_i32_0 = arith.constant 0 : i32
    return %arg0, %c0_i32 : i32, i32
  }
}

</mosaic_0001>

<bundles_post_ra>
// kernel: tpu_custom_call.1
= control target key start
LH: loop header
LB: loop body
LE: loop exit
PB: predicated region body
PF: predicated region fallthrough
CT: control target
= control target key end

     0   :  { %v152_v1 = vmov 0.0   ;;  %vm153_vm0 = vmmov 0   ;;  %s204_s0 = inlined_call_operand.vmem [shape: f32[16,32], index: 0, kind: input, shape index: {}]   ;;  %s205_s1 = inlined_call_operand.vmem [shape: bf16[32,16], index: 1, kind: input, shape index: {}]   ;;  %s206_s2 = inlined_call_operand.vmem [shape: f32[1,16], index: 2, kind: input, shape index: {}]   ;;  %s207_s3 = inlined_call_operand.hbm [shape: f32[16,16], index: 3, kind: output, shape index: {}]  }
   0x1   :  { %v126_v0 = vld [vmem:[%s205_s1] sm:$0xff]   ;;  %113 = vmatprep.subr.bf16.mxu0 %v152_v1  ;;  %v127_v2 = vld [vmem:[%s205_s1 + $0x8] sm:$0xff]   ;;  %117 = vmatprep.mubr.msk.bf16.mxu0 %vm153_vm0, %v152_v1 }
   0x2   :  { %114 = vmatpush3.bf16.msra.mxu0 %v126_v0  ;;  %v16_v3 = vld [vmem:[%s204_s0] sm:$0xff]  ;;  %v17_v4 = vld [vmem:[%s204_s0 + $0x8] sm:$0xff] }
   0x3   :  { %115 = vmatprep.subr.bf16.mxu0 %v152_v1 }
   0x4   :  { %8 = vsyncpa [#allocation3], 0  ;;  %v18_v5 = vpack.c.bf16 %v17_v4, %v16_v3  ;;  %vm42_vm1 = vcmask 261120   ;;  %v106_v6 = vld [vmem:[%s206_s2] ss:$0 sm:$0xff]  ;;  %s154_s1 = smov [#allocation2]  }
   0x5   :  { %s95_s22 = sshll.u32 %s154_s1, 4  ;;  %vm87_vm2 = vcmask 130048   ;;  %s96_s22 = int_to_ptr.vmem [resolvable:$true] %s95_s22 }
   0x6   :  { %116 = vmatpush3.bf16.msra.mxu0 %v127_v2  ;;  %s128_s0 = scalar_lea.vmem %s96_s22, 256  ;;  %p133_p1 = scmp.lt.s32.totalorder %s96_s22, %s96_s22 }
   0x7   :  { %p129_p0 = scmp.ne.s32.totalorder %s96_s22, %s128_s0  ;;  %p134_p2 = scmp.lt.s32.totalorder %s128_s0, %s128_s0 }
   0x9   :  { %118 = vmatmul.mubr.msk.bf16.vlgmr.msra.gmra.mrb[0].mxu0 %vm42_vm1, %v18_v5  ;;  %p135_p3 = por %p134_p2, %p133_p1 }
   0xb   :  { %p136_p4 = pnand %p135_p3, %p129_p0 }
  0xdc   :  { %v80_v7 = vpop.f32.mrb[0].mxu0 }
  0xdd   :  { %v81_v8 = vadd.f32 %v106_v6, %v80_v7  ;;  %v119_v9 = vpop.f32.mrb[1].mxu0 }
  0xde   :  { %v83_v10 = vpop.f32.mrb[2].mxu0 }
  0xdf   :  { %88 = vst.msk [vmem:[#allocation2] sm:$0xff] %vm87_vm2, %v81_v8  ;;  %v84_v11 = vadd.f32 %v106_v6, %v83_v10  ;;  %v120_v12 = vpop.f32.mrb[3].mxu0 }
  0xe1   :  { %89 = vst.msk [vmem:[#allocation2 + $0x8] sm:$0xff] %vm87_vm2, %v84_v11 }
  0xe2   :  { %139 = shalt.err (!%p136_p4)
}
  0xe3   :  { %s140_s24 = scalar_lea.hbm %s207_s3, 256 }
  0xe4   :  { %p141_p5 = scmp.ne.s32.totalorder %s207_s3, %s140_s24  ;;  %p144_p6 = scmp.lt.u32.totalorder %s140_s24, %s207_s3 }
  0xe6   :  { %p146_p7 = pnand %p144_p6, %p141_p5 }
  0xe8   :  { %149 = shalt.err (!%p146_p7)
}
  0xe9   :  { %s155_s29 = smov 128   ;;  %s156_s30 = smov 8  }
  0xea   :  { %101 = dma.vmem_to_hbm [thread:$0]  %s96_s22, 256, %s207_s3, [#allocation3], %s155_s29, %s155_s29, %s156_s30  }
  0xeb   :  { %150 = dma.done.wait [#allocation3], 256  }
  0xec   :  { %151 = vsyncadd [#allocation3], 4294967040 }
  0xed   :  { %105 = vsyncpa [#allocation3], 1 }

</bundles_post_ra>
